<compile_context>
chip_gen: v7x
topology: tpu7x:2x2x1
jax: 0.10.0
libtpu: 0.0.40
codegen_flags: <defaults>
</compile_context>

<pallas_src>
import functools

import jax
import jax.numpy as jnp
from jax.experimental import pallas as pl
from jax.experimental.pallas import tpu as pltpu


# ---------------------------------------------------------------------------
# Tiling / VMEM budget knobs.
# ---------------------------------------------------------------------------
_MIN_BLOCK_BYTES = 1 * 1024 * 1024        # keep streamed x blocks >= ~1 MiB
_TARGET_GRID_STEPS = 8                    # aim for ~4-8 steps to hide DMA pro/epilogue
_MIN_HW_RUN_BYTES = 2048                  # min contiguous run for strided two-pass DMAs
_FALLBACK_VMEM_BYTES = 64 * 1024 * 1024   # v7x-safe fallback if get_tpu_info fails


@functools.lru_cache(maxsize=1)
def _budgets():
    """Derive (vmem_limit, single_pass_max_image_bytes, target_block_bytes)."""
    try:
        phys = int(pltpu.get_tpu_info().vmem_capacity_bytes)
    except Exception:
        phys = _FALLBACK_VMEM_BYTES
    # ~3/4 of physical, capped at 96 MiB: 48 MiB on v7x (64 MiB parts),
    # 96 MiB on v5e/v6e (128 MiB parts).
    vmem_limit = min((phys * 3) // 4, 96 * 1024 * 1024)
    # One whole image must fit as a single streamed block with headroom for
    # double-buffered in/out plus f32 intermediates -> limit/4.
    single_pass_max = vmem_limit // 4
    # Two-pass per-step block target.
    target_block = min(4 * 1024 * 1024, max(_MIN_BLOCK_BYTES, vmem_limit // 8))
    return vmem_limit, single_pass_max, target_block


def _ceil_div(a, b):
    return -(-a // b)


def _clamp_hw_tile(hw_tile, HW, itemsize):
    """Multiple of 128, contiguous run >= ~2 KiB, capped at full HW."""
    min_lanes = _ceil_div(_MIN_HW_RUN_BYTES, itemsize)
    min_lanes = _ceil_div(min_lanes, 128) * 128
    hw_tile = max(int(hw_tile), min_lanes, 128)
    hw_tile = (hw_tile // 128) * 128
    if hw_tile >= HW:
        return HW
    return hw_tile


def _pick_hw_tile(C, HW, itemsize, target_block_bytes):
    lanes = max(128, target_block_bytes // (C * itemsize))
    return _clamp_hw_tile(lanes, HW, itemsize)


def _pick_b_tile(N, bytes_per_image, single_pass_max):
    """Batch tile for the fused single-pass path.

    Priorities: (1) block fits the VMEM budget, (2) block >= ~1 MiB so DMAs run
    near HBM peak, (3) ~TARGET_GRID_STEPS steps so prologue/epilogue DMA is
    hidden, (4) prefer tiles dividing N and an even step count (v7x balance).
    """
    max_b = max(1, min(N, single_pass_max // max(1, bytes_per_image)))
    min_b = max(1, _ceil_div(_MIN_BLOCK_BYTES, bytes_per_image))
    desired = max(1, _ceil_div(N, _TARGET_GRID_STEPS))
    b_tile = min(max(desired, min_b), max_b)

    # Prefer a divisor of N near the chosen tile: a partial last block would
    # compute gates on garbage rows (result still correct — those output rows
    # are discarded — but it wastes DMA/compute).
    if N % b_tile != 0:
        for d in range(b_tile - 1, 0, -1):
            if N % d == 0:
                if 2 * d >= b_tile or d * bytes_per_image >= _MIN_BLOCK_BYTES:
                    b_tile = d
                break

    # Nudge toward an even number of grid steps (keeps v7x's two TensorCores
    # balanced; harmless elsewhere) if it costs little block size.
    steps = _ceil_div(N, b_tile)
    if steps > 1 and steps % 2 == 1:
        for cand in range(b_tile - 1, 0, -1):
            if _ceil_div(N, cand) % 2 == 0 and \
                    cand * bytes_per_image >= _MIN_BLOCK_BYTES // 2:
                b_tile = cand
                break

    return max(1, b_tile)


# ---------------------------------------------------------------------------
# Single-pass path: one grid step = B_TILE whole images, fully fused.
# ---------------------------------------------------------------------------
def _single_pass_call(x3, w1t, b1r, w2t, b2r, b_tile, vmem_limit):
    N, C, HW = x3.shape
    grid_n = pl.cdiv(N, b_tile)
    native_rescale = x3.dtype != jnp.float32

    def kernel(x_ref, w1t_ref, b1_ref, w2t_ref, b2_ref, o_ref):
        x = x_ref[...]                                       # (b_tile, C, HW)
        # Global average pool (1/HW is folded into w1t); accumulate in f32.
        pooled = jnp.sum(x.astype(jnp.float32), axis=-1)     # (b_tile, C)
        # Gate MLP: lane-dense batched matmuls (weights pre-transposed).
        h = jnp.dot(pooled, w1t_ref[...],
                    preferred_element_type=jnp.float32) + b1_ref[...]
        h = jnp.maximum(h, 0.0)
        y = jax.nn.sigmoid(
            jnp.dot(h, w2t_ref[...],
                    preferred_element_type=jnp.float32) + b2_ref[...])  # (b_tile, C)
        if native_rescale:
            # Rescale in the native dtype: no full-block f32 temporaries.
            o_ref[...] = x * y[:, :, None].astype(o_ref.dtype)
        else:
            o_ref[...] = (x * y[:, :, None]).astype(o_ref.dtype)

    return pl.pallas_call(
        kernel,
        out_shape=jax.ShapeDtypeStruct((N, C, HW), x3.dtype),
        grid_spec=pltpu.PrefetchScalarGridSpec(
            num_scalar_prefetch=0,
            grid=(grid_n,),
            in_specs=[
                pl.BlockSpec((b_tile, C, HW), lambda n: (n, 0, 0)),  # x
                pl.BlockSpec(w1t.shape, lambda n: (0, 0)),           # w1.T/HW (C,Cr)
                pl.BlockSpec(b1r.shape, lambda n: (0, 0)),           # b1 (1,Cr)
                pl.BlockSpec(w2t.shape, lambda n: (0, 0)),           # w2.T (Cr,C)
                pl.BlockSpec(b2r.shape, lambda n: (0, 0)),           # b2 (1,C)
            ],
            out_specs=pl.BlockSpec((b_tile, C, HW), lambda n: (n, 0, 0)),
        ),
        compiler_params=pltpu.CompilerParams(
            dimension_semantics=("parallel",),
            vmem_limit_bytes=vmem_limit,
        ),
    )(x3, w1t, b1r, w2t, b2r)


# ---------------------------------------------------------------------------
# Two-pass fallback for images too large to stream as one block.
# ---------------------------------------------------------------------------
def _two_pass_call(x3, w1t, b1r, w2t, b2r, hw_tile, vmem_limit):
    N, C, HW = x3.shape
    n_hw = pl.cdiv(HW, hw_tile)
    needs_mask = (HW % hw_tile) != 0
    native_rescale = x3.dtype != jnp.float32

    # ---- Pass 1: pooled sum over HW (accumulated) + tiny gate MLP -> (N,C,1).
    def pool_gate_kernel(x_ref, w1t_ref, b1_ref, w2t_ref, b2_ref, y_ref, acc_ref):
        t = pl.program_id(1)
        last = pl.num_programs(1) - 1

        @pl.when(t == 0)
        def _():
            acc_ref[...] = jnp.zeros_like(acc_ref)

        x = x_ref[...]                                       # (1, C, hw_tile)
        if needs_mask:
            # Mask ONLY the last (partial) tile; full tiles take the cheap path.
            @pl.when(t != last)
            def _():
                acc_ref[...] += jnp.sum(x.astype(jnp.float32), axis=-1)

            @pl.when(t == last)
            def _():
                lane = jax.lax.broadcasted_iota(jnp.int32, x.shape, 2)
                valid = (t * hw_tile + lane) < HW
                acc_ref[...] += jnp.sum(
                    jnp.where(valid, x.astype(jnp.float32), 0.0), axis=-1)
        else:
            acc_ref[...] += jnp.sum(x.astype(jnp.float32), axis=-1)

        @pl.when(t == last)
        def _():
            pooled = acc_ref[...]                            # (1, C); 1/HW in w1t
            h = jnp.dot(pooled, w1t_ref[...],
                        preferred_element_type=jnp.float32) + b1_ref[...]
            h = jnp.maximum(h, 0.0)
            y = jax.nn.sigmoid(
                jnp.dot(h, w2t_ref[...],
                        preferred_element_type=jnp.float32) + b2_ref[...])
            y_ref[...] = y[:, :, None]                       # (1, C, 1)

    y = pl.pallas_call(
        pool_gate_kernel,
        out_shape=jax.ShapeDtypeStruct((N, C, 1), jnp.float32),
        grid_spec=pltpu.PrefetchScalarGridSpec(
            num_scalar_prefetch=0,
            grid=(N, n_hw),
            in_specs=[
                pl.BlockSpec((1, C, hw_tile), lambda n, t: (n, 0, t)),
                pl.BlockSpec(w1t.shape, lambda n, t: (0, 0)),
                pl.BlockSpec(b1r.shape, lambda n, t: (0, 0)),
                pl.BlockSpec(w2t.shape, lambda n, t: (0, 0)),
                pl.BlockSpec(b2r.shape, lambda n, t: (0, 0)),
            ],
            out_specs=pl.BlockSpec((1, C, 1), lambda n, t: (n, 0, 0)),
            scratch_shapes=[pltpu.VMEM((1, C), jnp.float32)],
        ),
        compiler_params=pltpu.CompilerParams(
            dimension_semantics=("parallel", "arbitrary"),
            vmem_limit_bytes=vmem_limit,
        ),
    )(x3, w1t, b1r, w2t, b2r)

    # ---- Pass 2: rescale x by the per-channel gate (pure streaming).
    def rescale_kernel(x_ref, y_ref, o_ref):
        x = x_ref[...]
        if native_rescale:
            o_ref[...] = x * y_ref[...].astype(o_ref.dtype)
        else:
            o_ref[...] = (x * y_ref[...]).astype(o_ref.dtype)

    return pl.pallas_call(
        rescale_kernel,
        out_shape=jax.ShapeDtypeStruct((N, C, HW), x3.dtype),
        grid_spec=pltpu.PrefetchScalarGridSpec(
            num_scalar_prefetch=0,
            grid=(N, n_hw),
            in_specs=[
                pl.BlockSpec((1, C, hw_tile), lambda n, t: (n, 0, t)),
                pl.BlockSpec((1, C, 1), lambda n, t: (n, 0, 0)),
            ],
            out_specs=pl.BlockSpec((1, C, hw_tile), lambda n, t: (n, 0, t)),
        ),
        compiler_params=pltpu.CompilerParams(
            dimension_semantics=("parallel", "parallel"),
            vmem_limit_bytes=vmem_limit,
        ),
    )(x3, y)


# ---------------------------------------------------------------------------
# Public wrapper.
# ---------------------------------------------------------------------------
def ca_layer(x, w1, b1, w2, b2, *, force_two_pass=False, hw_tile=None):
    """Channel attention layer.

    x : (N, C, H, W)
    w1: (C//r, C)   b1: (C//r,)
    w2: (C, C//r)   b2: (C,)
    returns (N, C, H, W)
    """
    N, C, H, W = x.shape
    Cr = w1.shape[0]
    HW = H * W
    itemsize = jnp.dtype(x.dtype).itemsize

    vmem_limit, single_pass_max, target_block = _budgets()

    x3 = x.reshape(N, C, HW)
    # Pre-transpose weights once in the wrapper so the in-kernel MLP is
    # row-major / lane-dense; fold 1/HW into w1 (commutes with the matmul);
    # biases as row vectors (no 1-lane column stores).
    inv_hw = 1.0 / HW
    w1t = (jnp.asarray(w1).astype(jnp.float32) * inv_hw).T   # (C, Cr)
    w2t = jnp.asarray(w2).astype(jnp.float32).T              # (Cr, C)
    b1r = jnp.asarray(b1).astype(jnp.float32).reshape(1, Cr)
    b2r = jnp.asarray(b2).astype(jnp.float32).reshape(1, C)

    bytes_per_image = C * HW * itemsize
    if force_two_pass or bytes_per_image > single_pass_max:
        if hw_tile is None:
            hw_tile = _pick_hw_tile(C, HW, itemsize, target_block)
        else:
            hw_tile = _clamp_hw_tile(hw_tile, HW, itemsize)
        out = _two_pass_call(x3, w1t, b1r, w2t, b2r, hw_tile, vmem_limit)
    else:
        b_tile = _pick_b_tile(N, bytes_per_image, single_pass_max)
        out = _single_pass_call(x3, w1t, b1r, w2t, b2r, b_tile, vmem_limit)

    return out.reshape(N, C, H, W)


def _reference(x, w1, b1, w2, b2):
    # Pure-JAX reference mirroring the PyTorch forward (all f32).
    xf = x.astype(jnp.float32)
    y = jnp.mean(xf, axis=(2, 3), keepdims=True)                  # (N,C,1,1)
    y = jnp.einsum("rc,nchw->nrhw", w1, y) + b1[None, :, None, None]
    y = jnp.maximum(y, 0.0)
    y = jnp.einsum("cr,nrhw->nchw", w2, y) + b2[None, :, None, None]
    y = jax.nn.sigmoid(y)
    return xf * y


if __name__ == "__main__":
    # Small shapes consistent with the module: channel=32, reduction=4 -> hidden=8
    N, C, H, W = 2, 32, 16, 16
    reduction = 4
    Cr = C // reduction

    key = jax.random.PRNGKey(0)
    kx, k1, k2, k3, k4, kx2 = jax.random.split(key, 6)

    x = jax.random.normal(kx, (N, C, H, W), dtype=jnp.float32)
    # Deterministic synthetic parameters (Conv2d 1x1 weights squeezed to 2D).
    w1 = jax.random.normal(k1, (Cr, C), dtype=jnp.float32) * 0.1
    b1 = jax.random.normal(k2, (Cr,), dtype=jnp.float32) * 0.1
    w2 = jax.random.normal(k3, (C, Cr), dtype=jnp.float32) * 0.1
    b2 = jax.random.normal(k4, (C,), dtype=jnp.float32) * 0.1

    # --- Main fused single-pass path (f32). ---
    ref = _reference(x, w1, b1, w2, b2)
    out = jax.block_until_ready(ca_layer(x, w1, b1, w2, b2))
    assert out.shape == (N, C, H, W)
    assert jnp.allclose(out, ref, atol=1e-5, rtol=1e-5), "single-pass mismatch"

    # --- Native-dtype (bf16) single-pass path. ---
    xb = x.astype(jnp.bfloat16)
    ref_b = _reference(xb, w1, b1, w2, b2)
    out_b = jax.block_until_ready(ca_layer(xb, w1, b1, w2, b2))
    assert out_b.dtype == jnp.bfloat16
    assert jnp.allclose(out_b.astype(jnp.float32), ref_b, atol=5e-2, rtol=5e-2), \
        "bf16 single-pass mismatch"

    # --- Large-image fallback path: forced two-pass with multiple HW tiles and
    #     a partial last tile (HW=1600, hw_tile=512) to exercise the
    #     accumulating pool + last-tile masking + rescale kernels. ---
    x2 = jax.random.normal(kx2, (N, C, 40, 40), dtype=jnp.float32)
    ref2 = _reference(x2, w1, b1, w2, b2)
    out2 = jax.block_until_ready(
        ca_layer(x2, w1, b1, w2, b2, force_two_pass=True, hw_tile=512))
    assert jnp.allclose(out2, ref2, atol=1e-5, rtol=1e-5), "two-pass mismatch"

    print("KERNEL_OK")
</pallas_src>

<mosaic_0001>
module attributes {stable_mosaic.version = 11 : i64} {
  func.func @kernel(%arg0: i32, %arg1: memref<2x32x256xf32, #tpu.memory_space<vmem>>, %arg2: memref<32x8xf32, #tpu.memory_space<vmem>>, %arg3: memref<1x8xf32, #tpu.memory_space<vmem>>, %arg4: memref<8x32xf32, #tpu.memory_space<vmem>>, %arg5: memref<1x32xf32, #tpu.memory_space<vmem>>, %arg6: memref<2x32x256xf32, #tpu.memory_space<vmem>>) attributes {dimension_semantics = [#tpu.dimension_semantics<parallel>], iteration_bounds = array<i64: 1>, scalar_prefetch = 0 : i64, scratch_operands = 0 : i64, tpu.core_type = #tpu.core_type<tc>, window_params = [{transform_indices = @transform_0, window_bounds = array<i64: 2, 32, 256>}, {pipeline_mode = #tpu.pipeline_mode<synchronous>, transform_indices = @transform_1, window_bounds = array<i64: 32, 8>}, {pipeline_mode = #tpu.pipeline_mode<synchronous>, transform_indices = @transform_2, window_bounds = array<i64: 1, 8>}, {pipeline_mode = #tpu.pipeline_mode<synchronous>, transform_indices = @transform_3, window_bounds = array<i64: 8, 32>}, {pipeline_mode = #tpu.pipeline_mode<synchronous>, transform_indices = @transform_4, window_bounds = array<i64: 1, 32>}, {transform_indices = @transform_5, window_bounds = array<i64: 2, 32, 256>}]} {
    %c0 = arith.constant 0 : index
    %c0_0 = arith.constant 0 : index
    %c0_1 = arith.constant 0 : index
    %0 = vector.load %arg1[%c0, %c0_0, %c0_1] : memref<2x32x256xf32, #tpu.memory_space<vmem>>, vector<2x32x256xf32>
    %cst = arith.constant dense<0.000000e+00> : vector<2x32xf32>
    %1 = vector.multi_reduction <add>, %0, %cst [2] : vector<2x32x256xf32> to vector<2x32xf32>
    %c0_2 = arith.constant 0 : index
    %c0_3 = arith.constant 0 : index
    %2 = vector.load %arg2[%c0_2, %c0_3] : memref<32x8xf32, #tpu.memory_space<vmem>>, vector<32x8xf32>
    %cst_4 = arith.constant dense<0.000000e+00> : vector<2x8xf32>
    %3 = tpu.matmul %1, %2, %cst_4 {dimension_numbers = #tpu.dot_dimension_numbers<[1], [0], [0], [1], [0, 0, 1, 1], [], []>} : vector<2x32xf32>, vector<32x8xf32>, vector<2x8xf32> -> vector<2x8xf32>
    %c0_5 = arith.constant 0 : index
    %c0_6 = arith.constant 0 : index
    %4 = vector.load %arg3[%c0_5, %c0_6] : memref<1x8xf32, #tpu.memory_space<vmem>>, vector<1x8xf32>
    %5 = vector.broadcast %4 : vector<1x8xf32> to vector<2x8xf32>
    %6 = arith.addf %3, %5 : vector<2x8xf32>
    %cst_7 = arith.constant 0.000000e+00 : f32
    %7 = vector.broadcast %cst_7 : f32 to vector<2x8xf32>
    %8 = arith.maximumf %6, %7 : vector<2x8xf32>
    %c0_8 = arith.constant 0 : index
    %c0_9 = arith.constant 0 : index
    %9 = vector.load %arg4[%c0_8, %c0_9] : memref<8x32xf32, #tpu.memory_space<vmem>>, vector<8x32xf32>
    %cst_10 = arith.constant dense<0.000000e+00> : vector<2x32xf32>
    %10 = tpu.matmul %8, %9, %cst_10 {dimension_numbers = #tpu.dot_dimension_numbers<[1], [0], [0], [1], [0, 0, 1, 1], [], []>} : vector<2x8xf32>, vector<8x32xf32>, vector<2x32xf32> -> vector<2x32xf32>
    %c0_11 = arith.constant 0 : index
    %c0_12 = arith.constant 0 : index
    %11 = vector.load %arg5[%c0_11, %c0_12] : memref<1x32xf32, #tpu.memory_space<vmem>>, vector<1x32xf32>
    %12 = vector.broadcast %11 : vector<1x32xf32> to vector<2x32xf32>
    %13 = arith.addf %10, %12 : vector<2x32xf32>
    %14 = arith.negf %13 : vector<2x32xf32>
    %15 = math.exp %14 : vector<2x32xf32>
    %cst_13 = arith.constant 1.000000e+00 : f32
    %16 = vector.broadcast %cst_13 : f32 to vector<2x32xf32>
    %17 = arith.addf %16, %15 : vector<2x32xf32>
    %18 = arith.divf %16, %17 : vector<2x32xf32>
    %19 = vector.shape_cast %18 : vector<2x32xf32> to vector<2x32x1xf32>
    %20 = vector.broadcast %19 : vector<2x32x1xf32> to vector<2x32x256xf32>
    %21 = arith.mulf %0, %20 : vector<2x32x256xf32>
    %c0_14 = arith.constant 0 : index
    %c0_15 = arith.constant 0 : index
    %c0_16 = arith.constant 0 : index
    %22 = vector.load %arg6[%c0_14, %c0_15, %c0_16] : memref<2x32x256xf32, #tpu.memory_space<vmem>>, vector<2x32x256xf32>
    tpu.vector_store %arg6[%c0_14, %c0_15, %c0_16], %21 {strides = array<i32>} : memref<2x32x256xf32, #tpu.memory_space<vmem>>, vector<2x32x256xf32>,
    return
  }
  func.func @transform_0(%arg0: i32) -> (i32, i32, i32) {
    %c0_i32 = arith.constant 0 : i32
    %c0_i32_0 = arith.constant 0 : i32
    %c0_i32_1 = arith.constant 0 : i32
    return %arg0, %c0_i32, %c0_i32_0 : i32, i32, i32
  }
  func.func @transform_1(%arg0: i32) -> (i32, i32) {
    %c0_i32 = arith.constant 0 : i32
    %c0_i32_0 = arith.constant 0 : i32
    %c0_i32_1 = arith.constant 0 : i32
    return %c0_i32, %c0_i32_0 : i32, i32
  }
  func.func @transform_2(%arg0: i32) -> (i32, i32) {
    %c0_i32 = arith.constant 0 : i32
    %c0_i32_0 = arith.constant 0 : i32
    %c0_i32_1 = arith.constant 0 : i32
    return %c0_i32, %c0_i32_0 : i32, i32
  }
  func.func @transform_3(%arg0: i32) -> (i32, i32) {
    %c0_i32 = arith.constant 0 : i32
    %c0_i32_0 = arith.constant 0 : i32
    %c0_i32_1 = arith.constant 0 : i32
    return %c0_i32, %c0_i32_0 : i32, i32
  }
  func.func @transform_4(%arg0: i32) -> (i32, i32) {
    %c0_i32 = arith.constant 0 : i32
    %c0_i32_0 = arith.constant 0 : i32
    %c0_i32_1 = arith.constant 0 : i32
    return %c0_i32, %c0_i32_0 : i32, i32
  }
  func.func @transform_5(%arg0: i32) -> (i32, i32, i32) {
    %c0_i32 = arith.constant 0 : i32
    %c0_i32_0 = arith.constant 0 : i32
    %c0_i32_1 = arith.constant 0 : i32
    return %arg0, %c0_i32, %c0_i32_0 : i32, i32, i32
  }
}

</mosaic_0001>

<bundles_post_ra>
// kernel: tpu_custom_call.1
= control target key start
LH: loop header
LB: loop body
LE: loop exit
PB: predicated region body
PF: predicated region fallthrough
CT: control target
= control target key end

     0   :  { %10 = vsyncpa [#allocation3], 0  ;;  %s636_s0 = inlined_call_operand.hbm [shape: f32[2,32,256], index: 0, kind: input, shape index: {}]   ;;  %s637_s1 = inlined_call_operand.vmem [shape: f32[32,8], index: 1, kind: input, shape index: {}]   ;;  %s638_s2 = inlined_call_operand.vmem [shape: f32[1,8], index: 2, kind: input, shape index: {}]   ;;  %s639_s3 = inlined_call_operand.vmem [shape: f32[8,32], index: 3, kind: input, shape index: {}]   ;;  %s640_s4 = inlined_call_operand.vmem [shape: f32[1,32], index: 4, kind: input, shape index: {}]   ;;  %s641_s5 = inlined_call_operand.hbm [shape: f32[2,32,256], index: 5, kind: output, shape index: {}]  }
   0x1   :  { %11 = vsyncpa [#allocation4], 0  ;;  %s484_s18 = smov [#allocation2]   ;;  %s436_s22 = scalar_lea.hbm %s636_s0, 2048 }
   0x2   :  { %s17_s19 = sshll.u32 %s484_s18, 4  ;;  %p437_p0 = scmp.ne.s32.totalorder %s636_s0, %s436_s22  ;;  %s18_s19 = int_to_ptr.vmem [resolvable:$true] %s17_s19 }
   0x3   :  { %p440_p1 = scmp.lt.u32.totalorder %s436_s22, %s636_s0 }
   0x5   :  { %p442_p2 = pnand %p440_p1, %p437_p0 }
   0x7   :  { %445 = shalt.err (!%p442_p2)
}
   0x8   :  { %s446_s27 = scalar_lea.vmem %s18_s19, 2048  ;;  %p451_p4 = scmp.lt.s32.totalorder %s18_s19, %s18_s19 }
   0x9   :  { %p447_p3 = scmp.ne.s32.totalorder %s18_s19, %s446_s27  ;;  %p452_p5 = scmp.lt.s32.totalorder %s446_s27, %s446_s27 }
   0xb   :  { %p453_p6 = por %p452_p5, %p451_p4 }
   0xd   :  { %p454_p7 = pnand %p453_p6, %p447_p3 }
   0xf   :  { %457 = shalt.err (!%p454_p7)
}
  0x10   :  { %s485_s28 = smov 256   ;;  %s486_s29 = smov 16  }
  0x11   :  { %23 = dma.hbm_to_vmem [thread:$0]  %s636_s0, 2048, %s18_s19, [#allocation3], %s485_s28, %s485_s28, %s486_s29  }
  0x12   :  { %480 = dma.done.wait [#allocation3], 2048  }
  0x13   :  { %481 = vsyncadd [#allocation3], 4294965248  ;;  %v536_v0 = vld [vmem:[#allocation2 + $0x40] sm:$0xff]  ;;  %v538_v1 = vld [vmem:[#allocation2 + $0x48] sm:$0xff]  ;;  %v487_v27 = vmov 0.0|0.0   ;;  %vm488_vm0 = vmmov 0   ;;  %v94_v32 = vlaneseq }
  0x14   :  { %v540_v2 = vld [vmem:[#allocation2] sm:$0xff]  ;;  %v63_v3 = vadd.f32 %v538_v1, %v536_v0  ;;  %v544_v4 = vld [vmem:[#allocation2 + $0x8] sm:$0xff]  ;;  %v546_v5 = vld [vmem:[#allocation2 + $0x50] sm:$0xff]  ;;  %419 = vmatprep.subr.bf16.mxu0 %v487_v27  ;;  %v489_v31 = vmov 0.0   ;;  %vm105_vm1 = vcmask 130112   ;;  %vm112_vm2 = vcmask 195712  }
  0x15   :  { %v548_v6 = vld [vmem:[#allocation2 + $0x58] sm:$0xff]  ;;  %v51_v7 = vadd.f32 %v544_v4, %v540_v2  ;;  %v552_v8 = vld [vmem:[#allocation2 + $0x10] sm:$0xff]  ;;  %v560_v12 = vld [vmem:[#allocation2 + $0x60] sm:$0xff]  ;;  %411 = vmatprep.mubr.msk.f32.mxu0 %vm488_vm0, %v489_v31  ;;  %414 = vmatprep.subr.mxu1 %v489_v31  ;;  %v95_v33 = vand.u32 127, %v94_v32  ;;  %v97_v38 = vshrl.u32 %v94_v32, 7  ;;  %vm119_vm3 = vcmask 261312  }
  0x16   :  { %v554_v9 = vld [vmem:[#allocation2 + $0x18] sm:$0xff]  ;;  %64 = vadd.xlane.f32.xlu1 %v63_v3  ;;  %v66_v10 = vadd.f32 %v548_v6, %v546_v5  ;;  %v562_v13 = vld [vmem:[#allocation2 + $0x68] sm:$0xff]  ;;  %v564_v14 = vld [vmem:[#allocation2 + $0x20] sm:$0xff]  ;;  %416 = vmatprep.mubr.msk.f32.mxu1 %vm488_vm0, %v489_v31  ;;  %vm140_vm4 = vcmask 1041409   ;;  %vm142_vm5 = vcmask 261120   ;;  %vm224_vm6 = vcmask 64512  }
  0x17   :  { %52 = vadd.xlane.f32.xlu0 %v51_v7  ;;  %v54_v11 = vadd.f32 %v554_v9, %v552_v8  ;;  %v566_v15 = vld [vmem:[#allocation2 + $0x28] sm:$0xff]  ;;  %v69_v16 = vadd.f32 %v562_v13, %v560_v12  ;;  %v572_v18 = vld [vmem:[#allocation2 + $0x70] sm:$0xff]  ;;  %v574_v19 = vld [vmem:[#allocation2 + $0x78] sm:$0xff]  ;;  %v100_v36 = vadd.s32 4294967288, %v95_v33  ;;  %v107_v37 = vadd.s32 4294967280, %v95_v33 }
  0x18   :  { %v57_v17 = vadd.f32 %v566_v15, %v564_v14  ;;  %v576_v20 = vld [vmem:[#allocation2 + $0x30] sm:$0xff]  ;;  %v578_v21 = vld [vmem:[#allocation2 + $0x38] sm:$0xff]  ;;  %v72_v22 = vadd.f32 %v574_v19, %v572_v18  ;;  %v75_v24 = vld [vmem:[%s637_s1] sm:$0xff]  ;;  %v114_v42 = vadd.s32 4294967272, %v95_v33  ;;  %v98_v44 = vsub.s32 %v95_v33, %v97_v38 }
  0x19   :  { %v60_v23 = vadd.f32 %v578_v21, %v576_v20  ;;  %v76_v25 = vld [vmem:[%s637_s1 + $0x8] sm:$0xff]  ;;  %v77_v28 = vld [vmem:[%s637_s1 + $0x10] sm:$0xff]  ;;  %v78_v29 = vld [vmem:[%s637_s1 + $0x18] sm:$0xff]  ;;  %v103_v40 = vsub.s32 %v100_v36, %v97_v38  ;;  %v110_v43 = vsub.s32 %v107_v37, %v97_v38  ;;  %v325_v33 = vsub.s32 1, %v97_v38 }
  0x1a   :  { %67 = vadd.xlane.f32.xlu1 %v66_v10  ;;  %v420_v26 = vpack.c.bf16 %v76_v25, %v75_v24  ;;  %v423_v30 = vpack.c.bf16 %v78_v29, %v77_v28  ;;  %v117_v48 = vsub.s32 %v114_v42, %v97_v38  ;;  %v216_v7 = vld [vmem:[%s639_s3] sm:$0xff] }
  0x1b   :  { %55 = vadd.xlane.f32.xlu0 %v54_v11  ;;  %415 = vmatpush3.msra.mxu1 %v216_v7  ;;  %v391_v10 = vld [vmem:[%s638_s2] ss:$0 sm:$0xff]  ;;  %s490_s2 = smov [#allocation5]  }
  0x1c   :  { %421 = vmatpush3.bf16.msra.mxu0 %v420_v26  ;;  %s379_s3 = sshll.u32 %s490_s2, 4  ;;  %s380_s3 = int_to_ptr.vmem [resolvable:$true] %s379_s3 }
  0x1d   :  { %422 = vmatprep.subr.bf16.mxu0 %v487_v27  ;;  %p463_p9 = scmp.lt.s32.totalorder %s380_s3, %s380_s3 }
  0x1e   :  { %70 = vadd.xlane.f32.xlu1 %v69_v16 }
  0x1f   :  { %58 = vadd.xlane.f32.xlu0 %v57_v17 }
  0x20   :  { %424 = vmatpush3.bf16.msra.mxu0 %v423_v30  ;;  %v306_v30 = vsub.s32 0, %v97_v38 }
  0x22   :  { %73 = vadd.xlane.f32.xlu1 %v72_v22 }
  0x23   :  { %61 = vadd.xlane.f32.xlu0 %v60_v23  ;;  %v393_v23 = vld [vmem:[%s640_s4] ss:$0 sm:$0xff]  ;;  %s458_s4 = scalar_lea.vmem %s380_s3, 2048 }
  0x24   :  { %p459_p8 = scmp.ne.s32.totalorder %s380_s3, %s458_s4  ;;  %p464_p10 = scmp.lt.s32.totalorder %s458_s4, %s458_s4 }
  0x26   :  { %p465_p11 = por %p464_p10, %p463_p9 }
  0x28   :  { %p466_p12 = pnand %p465_p11, %p459_p8 }
  0xa3   :  { %v65_v34 = vpop.xlane.xlu1 %64 }
  0xa4   :  { %v53_v35 = vpop.xlane.xlu0 %52  ;;  %v124_v51 = vrot.slane %v65_v34, %v98_v44 }
  0xa5   :  { %v99_v53 = vrot.slane %v53_v35, %v98_v44 }
  0xa7   :  { %v68_v39 = vpop.xlane.xlu1 %67 }
  0xa8   :  { %v56_v41 = vpop.xlane.xlu0 %55  ;;  %v128_v46 = vrot.slane %v68_v39, %v103_v40 }
  0xa9   :  { %v104_v49 = vrot.slane %v56_v41, %v103_v40 }
  0xaa   :  { %v129_v55 = vsel %vm105_vm1, %v128_v46, %v124_v51 }
  0xab   :  { %v71_v45 = vpop.xlane.xlu1 %70  ;;  %v106_v58 = vsel %vm105_vm1, %v104_v49, %v99_v53 }
  0xac   :  { %v59_v47 = vpop.xlane.xlu0 %58  ;;  %v133_v50 = vrot.slane %v71_v45, %v110_v43 }
  0xad   :  { %v111_v52 = vrot.slane %v59_v47, %v110_v43 }
  0xae   :  { %v134_v59 = vsel %vm112_vm2, %v133_v50, %v129_v55 }
  0xaf   :  { %v74_v54 = vpop.xlane.xlu1 %73  ;;  %v113_v61 = vsel %vm112_vm2, %v111_v52, %v106_v58 }
  0xb0   :  { %v138_v56 = vrot.slane %v74_v54, %v117_v48  ;;  %v62_v57 = vpop.xlane.xlu0 %61 }
  0xb1   :  { %v118_v60 = vrot.slane %v62_v57, %v117_v48 }
  0xb2   :  { %v139_v62 = vsel %vm119_vm3, %v138_v56, %v134_v59 }
  0xb3   :  { %v120_v63 = vsel %vm119_vm3, %v118_v60, %v113_v61 }
  0xb4   :  { %v141_v3 = vsel %vm140_vm4, %v139_v62, %v120_v63 }
  0xb5   :  { %412 = vmatmul.mubr.msk.f32.vlgmr.msra.gmra.mrb[0].mxu0 %vm142_vm5, %v141_v3 }
 0x188   :  { %v211_v11 = vpop.f32.mrb[0].mxu0 }
 0x189   :  { %v212_v16 = vadd.f32 %v391_v10, %v211_v11  ;;  %v413_v17 = vpop.f32.mrb[1].mxu0 }
 0x18b   :  { %v215_v22 = vmax.f32 %v212_v16, 0.0 }
 0x18d   :  { %417 = vmatmul.mubr.msk.f32.vlgmr.msra.gmra.mrb[0].mxu1 %vm224_vm6, %v215_v22 }
 0x260   :  { %v294_v24 = vpop.f32.mrb[0].mxu1 }
 0x261   :  { %v295_v25 = vadd.f32 %v393_v23, %v294_v24  ;;  %v418_v26 = vpop.f32.mrb[1].mxu1 }
 0x263   :  { %v395_v27 = vmul.f32 -1.442695, %v295_v25 }
 0x265   :  { %432 = vpow2.f32 %v395_v27 }
 0x26f   :  { %v433_v28 = vpop.eup %432 }
 0x270   :  { %v301_v29 = vadd.f32 1.0, %v433_v28 }
 0x272   :  { %434 = vrcp.f32 %v301_v29 }
 0x27c   :  { %v435_v31 = vpop.eup %434 }
 0x27d   :  { %v307_v32 = vrot.slane %v435_v31, %v306_v30  ;;  %v326_v34 = vrot.slane %v435_v31, %v325_v33 }
 0x27f   :  { %313 = vbcast.lane.b32.xlu1 %v307_v32, 264  ;;  %309 = vbcast.lane.b32.xlu0 %v307_v32, 256 }
 0x283   :  { %317 = vbcast.lane.b32.xlu1 %v307_v32, 272  ;;  %328 = vbcast.lane.b32.xlu0 %v326_v34, 256 }
 0x287   :  { %321 = vbcast.lane.b32.xlu1 %v307_v32, 280  ;;  %336 = vbcast.lane.b32.xlu0 %v326_v34, 272 }
 0x28b   :  { %332 = vbcast.lane.b32.xlu1 %v326_v34, 264 }
 0x28f   :  { %340 = vbcast.lane.b32.xlu1 %v326_v34, 280 }
 0x2f1   :  { %v314_v35 = vpop.permute.xlu1 %313  ;;  %v310_v36 = vpop.permute.xlu0 %309 }
 0x2f2   :  { %v344_v37 = vmul.f32 %v314_v35, %v552_v8  ;;  %v345_v39 = vmul.f32 %v314_v35, %v554_v9  ;;  %v342_v40 = vmul.f32 %v310_v36, %v540_v2  ;;  %v343_v41 = vmul.f32 %v310_v36, %v544_v4 }
 0x2f4   :  { %360 = vst [vmem:[#allocation5 + $0x10] sm:$0xff] %v344_v37  ;;  %361 = vst [vmem:[#allocation5 + $0x18] sm:$0xff] %v345_v39 }
 0x2f5   :  { %358 = vst [vmem:[#allocation5] sm:$0xff] %v342_v40  ;;  %359 = vst [vmem:[#allocation5 + $0x8] sm:$0xff] %v343_v41  ;;  %v318_v38 = vpop.permute.xlu1 %317  ;;  %v329_v42 = vpop.permute.xlu0 %328 }
 0x2f6   :  { %v346_v43 = vmul.f32 %v318_v38, %v564_v14  ;;  %v347_v44 = vmul.f32 %v318_v38, %v566_v15  ;;  %v350_v45 = vmul.f32 %v329_v42, %v536_v0  ;;  %v351_v8 = vmul.f32 %v329_v42, %v538_v1 }
 0x2f8   :  { %362 = vst [vmem:[#allocation5 + $0x20] sm:$0xff] %v346_v43  ;;  %363 = vst [vmem:[#allocation5 + $0x28] sm:$0xff] %v347_v44 }
 0x2f9   :  { %366 = vst [vmem:[#allocation5 + $0x40] sm:$0xff] %v350_v45  ;;  %367 = vst [vmem:[#allocation5 + $0x48] sm:$0xff] %v351_v8  ;;  %v322_v2 = vpop.permute.xlu1 %321  ;;  %v337_v4 = vpop.permute.xlu0 %336 }
 0x2fa   :  { %v348_v9 = vmul.f32 %v322_v2, %v576_v20  ;;  %v349_v46 = vmul.f32 %v322_v2, %v578_v21  ;;  %v354_v47 = vmul.f32 %v337_v4, %v560_v12  ;;  %v355_v14 = vmul.f32 %v337_v4, %v562_v13 }
 0x2fc   :  { %364 = vst [vmem:[#allocation5 + $0x30] sm:$0xff] %v348_v9  ;;  %365 = vst [vmem:[#allocation5 + $0x38] sm:$0xff] %v349_v46 }
 0x2fd   :  { %370 = vst [vmem:[#allocation5 + $0x60] sm:$0xff] %v354_v47  ;;  %371 = vst [vmem:[#allocation5 + $0x68] sm:$0xff] %v355_v14  ;;  %v333_v0 = vpop.permute.xlu1 %332 }
 0x2fe   :  { %v352_v1 = vmul.f32 %v333_v0, %v546_v5  ;;  %v353_v15 = vmul.f32 %v333_v0, %v548_v6 }
 0x300   :  { %368 = vst [vmem:[#allocation5 + $0x50] sm:$0xff] %v352_v1  ;;  %369 = vst [vmem:[#allocation5 + $0x58] sm:$0xff] %v353_v15 }
 0x301   :  { %v341_v20 = vpop.permute.xlu1 %340 }
 0x302   :  { %v356_v21 = vmul.f32 %v341_v20, %v572_v18  ;;  %v357_v12 = vmul.f32 %v341_v20, %v574_v19 }
 0x304   :  { %372 = vst [vmem:[#allocation5 + $0x70] sm:$0xff] %v356_v21  ;;  %373 = vst [vmem:[#allocation5 + $0x78] sm:$0xff] %v357_v12 }
 0x305   :  { %469 = shalt.err (!%p466_p12)
}
 0x306   :  { %s470_s21 = scalar_lea.hbm %s641_s5, 2048 }
 0x307   :  { %p471_p13 = scmp.ne.s32.totalorder %s641_s5, %s470_s21  ;;  %p474_p0 = scmp.lt.u32.totalorder %s470_s21, %s641_s5 }
 0x309   :  { %p476_p1 = pnand %p474_p0, %p471_p13 }
 0x30b   :  { %479 = shalt.err (!%p476_p1)
}
 0x30c   :  { %385 = dma.vmem_to_hbm [thread:$0]  %s380_s3, 2048, %s641_s5, [#allocation4], %s485_s28, %s485_s28, %s486_s29  }
 0x30d   :  { %482 = dma.done.wait [#allocation4], 2048  }
 0x30e   :  { %483 = vsyncadd [#allocation4], 4294965248 }
 0x30f   :  { %389 = vsyncpa [#allocation3], 1 }
 0x310   :  { %390 = vsyncpa [#allocation4], 1 }

</bundles_post_ra>
